<compile_context>
chip_gen: v5e
topology: v5e:2x2
jax: 0.10.0
libtpu: 0.0.40
codegen_flags: <defaults>
</compile_context>

<pallas_src>
import functools

import jax
import jax.numpy as jnp
from jax.experimental import pallas as pl
from jax.experimental.pallas import tpu as pltpu

_W = 512            # slab lane width (multiple of 128 -> unmasked wide stores)
_BLOCK_ROWS = 512   # rows per grid step: 512*512*4B = 1 MiB per f32 input tile


def _cdiv(a, b):
    return -(-a // b)


def _round_up(a, b):
    return _cdiv(a, b) * b


def _bce_with_logits_f32(x, t):
    # Numerically stable: max(x,0) - x*t + log(1 + exp(-|x|))
    return jnp.maximum(x, 0.0) - x * t + jnp.log1p(jnp.exp(-jnp.abs(x)))


def _elemwise_kernel(x_ref, t_ref, m_ref, o_ref):
    x = x_ref[...].astype(jnp.float32)
    t = t_ref[...].astype(jnp.float32)
    m = m_ref[...].astype(jnp.float32)
    o_ref[...] = (_bce_with_logits_f32(x, t) * m).astype(o_ref.dtype)


def _reduce_kernel(x_ref, t_ref, m_ref, acc_ref):
    # acc_ref: (16, _W) resident accumulator for this core.
    #   rows 0..7  -> partial sums of masked loss
    #   rows 8..15 -> partial sums of mask
    @pl.when(pl.program_id(1) == 0)
    def _init():
        acc_ref[...] = jnp.zeros_like(acc_ref)

    x = x_ref[...].astype(jnp.float32)
    t = t_ref[...].astype(jnp.float32)
    m = m_ref[...].astype(jnp.float32)
    loss = _bce_with_logits_f32(x, t) * m

    w = loss.shape[-1]
    # Fold the block's rows onto 8 sublanes with pure vreg (VPU) adds; the
    # reshape is tile-aligned (groups of 8 rows), so no data movement.
    loss8 = loss.reshape(-1, 8, w).sum(axis=0)
    mask8 = m.reshape(-1, 8, w).sum(axis=0)
    acc_ref[0:8, :] = acc_ref[0:8, :] + loss8
    acc_ref[8:16, :] = acc_ref[8:16, :] + mask8


def _to_slab(arr, rows_total):
    flat = arr.reshape(-1)
    pad = rows_total * _W - flat.shape[0]
    if pad:
        # TODO(synk): for very large unaligned inputs this pad materializes a
        # copy; an ANY-memspace manual-DMA tail would avoid it.
        flat = jnp.pad(flat, (0, pad))
    return flat.reshape(rows_total, _W)


@functools.partial(jax.jit, static_argnames=("reduction",))
def masked_bce_with_logits_loss(inputs, target, mask, reduction="mean"):
    """JAX/Pallas equivalent of MaskedBCEWithLogitsLoss.forward."""
    if jnp.issubdtype(mask.dtype, jnp.bool_):
        mask = mask.astype(jnp.float32)

    orig_shape = inputs.shape
    n = inputs.size
    rows = _round_up(max(_cdiv(n, _W), 1), 8)
    br = min(_BLOCK_ROWS, rows)
    nblocks = _cdiv(rows, br)

    if reduction not in ("mean", "sum"):
        # 'none' and unknown reduction strings both return the masked
        # elementwise loss (matches the PyTorch module's else-branch).
        rows_total = nblocks * br
        x2, t2, m2 = (_to_slab(a, rows_total) for a in (inputs, target, mask))
        spec = pl.BlockSpec((br, _W), lambda i: (i, 0))
        out = pl.pallas_call(
            _elemwise_kernel,
            out_shape=jax.ShapeDtypeStruct((rows_total, _W), inputs.dtype),
            grid_spec=pltpu.PrefetchScalarGridSpec(
                num_scalar_prefetch=0,
                grid=(nblocks,),
                in_specs=[spec, spec, spec],
                out_specs=spec,
            ),
            compiler_params=pltpu.CompilerParams(
                dimension_semantics=("parallel",)),
        )(x2, t2, m2)
        return out.reshape(-1)[:n].reshape(orig_shape)

    # 'mean' / 'sum': split work over a leading parallel axis (both TCs on
    # v7x), sequential accumulation along the trailing arbitrary axis.
    nc = 2 if nblocks >= 2 else 1
    steps = _cdiv(nblocks, nc)
    rows_total = nc * steps * br
    x2, t2, m2 = (_to_slab(a, rows_total) for a in (inputs, target, mask))

    in_spec = pl.BlockSpec((br, _W), lambda c, i: (c * steps + i, 0))
    out_spec = pl.BlockSpec((16, _W), lambda c, i: (c, 0))

    acc = pl.pallas_call(
        _reduce_kernel,
        out_shape=jax.ShapeDtypeStruct((nc * 16, _W), jnp.float32),
        grid_spec=pltpu.PrefetchScalarGridSpec(
            num_scalar_prefetch=0,
            grid=(nc, steps),
            in_specs=[in_spec, in_spec, in_spec],
            out_specs=out_spec,
        ),
        compiler_params=pltpu.CompilerParams(
            dimension_semantics=("parallel", "arbitrary")),
    )(x2, t2, m2)

    # Tiny final combine outside the kernel: (nc, {loss,mask}, 8, W).
    sums = acc.reshape(nc, 2, 8, _W).sum(axis=(0, 2, 3))
    sum_loss, sum_mask = sums[0], sums[1]
    if reduction == "mean":
        # 0/0 -> NaN for an all-zero mask, same as the PyTorch module.
        return sum_loss / sum_mask
    return sum_loss


def _reference(inputs, target, mask, reduction):
    x = inputs.astype(jnp.float32)
    t = target.astype(jnp.float32)
    m = mask.astype(jnp.float32)
    loss = _bce_with_logits_f32(x, t) * m
    if reduction == "mean":
        return jnp.sum(loss) / jnp.sum(m)
    if reduction == "sum":
        return jnp.sum(loss)
    return loss


if __name__ == "__main__":
    key = jax.random.PRNGKey(0)
    k1, k2, k3 = jax.random.split(key, 3)
    ok = True

    # Primary: small NCHW shape consistent with the module's typical use.
    shape = (2, 4, 16, 16)
    logits = jax.random.normal(k1, shape, dtype=jnp.float32)
    target = jax.random.bernoulli(k2, 0.5, shape).astype(jnp.float32)
    mask = jax.random.bernoulli(k3, 0.7, shape).astype(jnp.float32)
    for reduction in ("mean", "sum", "none"):
        out = jax.block_until_ready(
            masked_bce_with_logits_loss(logits, target, mask, reduction=reduction))
        ref = _reference(logits, target, mask, reduction)
        if not jnp.allclose(out, ref, rtol=1e-5, atol=1e-5):
            ok = False
            print(f"MISMATCH shape={shape} reduction={reduction}")

    # Secondary: large enough to exercise multi-block tiling, the 2-core split
    # of the reduction, and tail padding (n not a multiple of the slab tile).
    shape2 = (4, 8, 144, 144)
    l2 = jax.random.normal(k1, shape2, dtype=jnp.float32)
    t2 = jax.random.bernoulli(k2, 0.5, shape2).astype(jnp.float32)
    m2 = jax.random.bernoulli(k3, 0.7, shape2).astype(jnp.float32)
    for reduction in ("mean", "sum"):
        out = jax.block_until_ready(
            masked_bce_with_logits_loss(l2, t2, m2, reduction=reduction))
        ref = _reference(l2, t2, m2, reduction)
        if not jnp.allclose(out, ref, rtol=2e-4, atol=1e-3):
            ok = False
            print(f"MISMATCH shape={shape2} reduction={reduction}")

    # bf16 inputs stay bf16 through HBM (kernel computes in f32 in-register).
    shape3 = (2, 4, 32, 32)
    l3 = jax.random.normal(k1, shape3, dtype=jnp.bfloat16)
    t3 = jax.random.bernoulli(k2, 0.5, shape3).astype(jnp.bfloat16)
    m3 = jax.random.bernoulli(k3, 0.7, shape3).astype(jnp.bfloat16)
    out = jax.block_until_ready(
        masked_bce_with_logits_loss(l3, t3, m3, reduction="mean"))
    ref = _reference(l3, t3, m3, "mean")
    if not jnp.allclose(out, ref, rtol=1e-2, atol=1e-2):
        ok = False
        print("MISMATCH bf16 mean")

    if ok:
        print("KERNEL_OK")
</pallas_src>

<mosaic_0001>
module attributes {stable_mosaic.version = 11 : i64} {
  func.func @_reduce_kernel(%arg0: i32, %arg1: i32, %arg2: memref<8x512xf32, #tpu.memory_space<vmem>>, %arg3: memref<8x512xf32, #tpu.memory_space<vmem>>, %arg4: memref<8x512xf32, #tpu.memory_space<vmem>>, %arg5: memref<16x512xf32, #tpu.memory_space<vmem>>) attributes {dimension_semantics = [#tpu.dimension_semantics<parallel>, #tpu.dimension_semantics<arbitrary>], iteration_bounds = array<i64: 1, 1>, scalar_prefetch = 0 : i64, scratch_operands = 0 : i64, tpu.core_type = #tpu.core_type<tc>, window_params = [{transform_indices = @transform_0, window_bounds = array<i64: 8, 512>}, {transform_indices = @transform_1, window_bounds = array<i64: 8, 512>}, {transform_indices = @transform_2, window_bounds = array<i64: 8, 512>}, {transform_indices = @transform_3, window_bounds = array<i64: 16, 512>}]} {
    %c0_i32 = arith.constant 0 : i32
    %0 = arith.cmpi eq, %arg1, %c0_i32 : i32
    %1 = arith.extui %0 : i1 to i32
    %c0_i32_0 = arith.constant 0 : i32
    %2 = arith.cmpi ne, %1, %c0_i32_0 : i32
    scf.if %2 {
      %cst_16 = arith.constant 0.000000e+00 : f32
      %27 = vector.broadcast %cst_16 : f32 to vector<16x512xf32>
      %c0_17 = arith.constant 0 : index
      %c0_18 = arith.constant 0 : index
      %28 = vector.load %arg5[%c0_17, %c0_18] : memref<16x512xf32, #tpu.memory_space<vmem>>, vector<16x512xf32>
      tpu.vector_store %arg5[%c0_17, %c0_18], %27 {strides = array<i32>} : memref<16x512xf32, #tpu.memory_space<vmem>>, vector<16x512xf32>,
    } else {
    }
    %c0 = arith.constant 0 : index
    %c0_1 = arith.constant 0 : index
    %3 = vector.load %arg2[%c0, %c0_1] : memref<8x512xf32, #tpu.memory_space<vmem>>, vector<8x512xf32>
    %c0_2 = arith.constant 0 : index
    %c0_3 = arith.constant 0 : index
    %4 = vector.load %arg3[%c0_2, %c0_3] : memref<8x512xf32, #tpu.memory_space<vmem>>, vector<8x512xf32>
    %c0_4 = arith.constant 0 : index
    %c0_5 = arith.constant 0 : index
    %5 = vector.load %arg4[%c0_4, %c0_5] : memref<8x512xf32, #tpu.memory_space<vmem>>, vector<8x512xf32>
    %cst = arith.constant 0.000000e+00 : f32
    %6 = vector.broadcast %cst : f32 to vector<8x512xf32>
    %7 = arith.maximumf %3, %6 : vector<8x512xf32>
    %8 = arith.mulf %3, %4 : vector<8x512xf32>
    %9 = arith.subf %7, %8 : vector<8x512xf32>
    %10 = math.absf %3 : vector<8x512xf32>
    %cst_6 = arith.constant 0.000000e+00 : f32
    %11 = vector.broadcast %cst_6 : f32 to vector<8x512xf32>
    %12 = arith.subf %11, %10 : vector<8x512xf32>
    %13 = math.exp %12 : vector<8x512xf32>
    %14 = math.log1p %13 : vector<8x512xf32>
    %15 = arith.addf %9, %14 : vector<8x512xf32>
    %16 = arith.mulf %15, %5 : vector<8x512xf32>
    %17 = vector.shape_cast %16 : vector<8x512xf32> to vector<1x8x512xf32>
    %cst_7 = arith.constant dense<0.000000e+00> : vector<8x512xf32>
    %18 = vector.multi_reduction <add>, %17, %cst_7 [0] : vector<1x8x512xf32> to vector<8x512xf32>
    %19 = vector.shape_cast %5 : vector<8x512xf32> to vector<1x8x512xf32>
    %cst_8 = arith.constant dense<0.000000e+00> : vector<8x512xf32>
    %20 = vector.multi_reduction <add>, %19, %cst_8 [0] : vector<1x8x512xf32> to vector<8x512xf32>
    %c0_9 = arith.constant 0 : index
    %c0_10 = arith.constant 0 : index
    %21 = vector.load %arg5[%c0_9, %c0_10] : memref<16x512xf32, #tpu.memory_space<vmem>>, vector<8x512xf32>
    %22 = arith.addf %21, %18 : vector<8x512xf32>
    %c0_11 = arith.constant 0 : index
    %c0_12 = arith.constant 0 : index
    %23 = vector.load %arg5[%c0_11, %c0_12] : memref<16x512xf32, #tpu.memory_space<vmem>>, vector<8x512xf32>
    tpu.vector_store %arg5[%c0_11, %c0_12], %22 {strides = array<i32>} : memref<16x512xf32, #tpu.memory_space<vmem>>, vector<8x512xf32>,
    %c8 = arith.constant 8 : index
    %c0_13 = arith.constant 0 : index
    %24 = vector.load %arg5[%c8, %c0_13] : memref<16x512xf32, #tpu.memory_space<vmem>>, vector<8x512xf32>
    %25 = arith.addf %24, %20 : vector<8x512xf32>
    %c8_14 = arith.constant 8 : index
    %c0_15 = arith.constant 0 : index
    %26 = vector.load %arg5[%c8_14, %c0_15] : memref<16x512xf32, #tpu.memory_space<vmem>>, vector<8x512xf32>
    tpu.vector_store %arg5[%c8_14, %c0_15], %25 {strides = array<i32>} : memref<16x512xf32, #tpu.memory_space<vmem>>, vector<8x512xf32>,
    return
  }
  func.func @transform_0(%arg0: i32, %arg1: i32) -> (i32, i32) {
    %c1_i32 = arith.constant 1 : i32
    %0 = arith.muli %arg0, %c1_i32 : i32
    %1 = arith.addi %0, %arg1 : i32
    %c0_i32 = arith.constant 0 : i32
    %c0_i32_0 = arith.constant 0 : i32
    return %1, %c0_i32 : i32, i32
  }
  func.func @transform_1(%arg0: i32, %arg1: i32) -> (i32, i32) {
    %c1_i32 = arith.constant 1 : i32
    %0 = arith.muli %arg0, %c1_i32 : i32
    %1 = arith.addi %0, %arg1 : i32
    %c0_i32 = arith.constant 0 : i32
    %c0_i32_0 = arith.constant 0 : i32
    return %1, %c0_i32 : i32, i32
  }
  func.func @transform_2(%arg0: i32, %arg1: i32) -> (i32, i32) {
    %c1_i32 = arith.constant 1 : i32
    %0 = arith.muli %arg0, %c1_i32 : i32
    %1 = arith.addi %0, %arg1 : i32
    %c0_i32 = arith.constant 0 : i32
    %c0_i32_0 = arith.constant 0 : i32
    return %1, %c0_i32 : i32, i32
  }
  func.func @transform_3(%arg0: i32, %arg1: i32) -> (i32, i32) {
    %c0_i32 = arith.constant 0 : i32
    %c0_i32_0 = arith.constant 0 : i32
    return %arg0, %c0_i32 : i32, i32
  }
}

</mosaic_0001>

<bundles_post_ra>
// kernel: masked_bce_with_logits_loss.1
= control target key start
LH: loop header
LB: loop body
LE: loop exit
PB: predicated region body
PF: predicated region fallthrough
CT: control target
= control target key end

     0   :  { %s363_s0 = inlined_call_operand.vmem [shape: f32[8,512], index: 0, kind: input, shape index: {}]   ;;  %s364_s2 = inlined_call_operand.vmem [shape: f32[8,512], index: 2, kind: input, shape index: {}]   ;;  %s365_s3 = inlined_call_operand.vmem [shape: f32[16,512], index: 3, kind: output, shape index: {}]   ;;  %s366_s1 = inlined_call_operand.vmem [shape: f32[8,512], index: 1, kind: input, shape index: {}]  }
   0x1   :  { %v264_v0 = vld [vmem:[%s363_s0] sm:$0xff]  ;;  %v275_v3 = vld [vmem:[%s363_s0 + $0x8] sm:$0xff]  ;;  %v281_v5 = vld [vmem:[%s363_s0 + $0x10] sm:$0xff] }
   0x2   :  { %v269_v1 = vld [vmem:[%s364_s2] sm:$0xff]  ;;  %v110_v2 = vand.u32 2147483647, %v264_v0  ;;  %v111_v4 = vand.u32 2147483647, %v275_v3  ;;  %v286_v7 = vld [vmem:[%s363_s0 + $0x18] sm:$0xff] }
   0x3   :  { %v112_v9 = vand.u32 2147483647, %v281_v5  ;;  %198 = vst [vmem:[%s365_s3 + $0x20] sm:$0xff] %v269_v1  ;;  %v296_v11 = vld [vmem:[%s364_s2 + $0x8] sm:$0xff]  ;;  %v301_v12 = vld [vmem:[%s364_s2 + $0x10] sm:$0xff]  ;;  %v307_v16 = vld [vmem:[%s364_s2 + $0x18] sm:$0xff] }
   0x4   :  { %v114_v6 = vsub.f32 0.0, %v110_v2  ;;  %v115_v8 = vsub.f32 0.0, %v111_v4  ;;  %v113_v13 = vand.u32 2147483647, %v286_v7  ;;  %199 = vst [vmem:[%s365_s3 + $0x28] sm:$0xff] %v296_v11  ;;  %v90_v21 = vld [vmem:[%s366_s1] sm:$0xff] }
   0x5   :  { %v116_v15 = vsub.f32 0.0, %v112_v9  ;;  %200 = vst [vmem:[%s365_s3 + $0x30] sm:$0xff] %v301_v12  ;;  %v91_v25 = vld [vmem:[%s366_s1 + $0x8] sm:$0xff]  ;;  %v98_v29 = vmax.f32 %v264_v0, 0.0  ;;  %v102_v30 = vmul.f32 %v90_v21, %v264_v0  ;;  %v99_v31 = vmax.f32 %v275_v3, 0.0  ;;  %v92_v35 = vld [vmem:[%s366_s1 + $0x10] sm:$0xff] }
   0x6   :  { %v118_v10 = vmul.f32 1.442695, %v114_v6  ;;  %v120_v14 = vmul.f32 1.442695, %v115_v8  ;;  %v117_v17 = vsub.f32 0.0, %v113_v13  ;;  %201 = vst [vmem:[%s365_s3 + $0x38] sm:$0xff] %v307_v16  ;;  %v103_v34 = vmul.f32 %v91_v25, %v275_v3 }
   0x7   :  { %v122_v18 = vmul.f32 1.442695, %v116_v15  ;;  %v93_v40 = vld [vmem:[%s366_s1 + $0x18] sm:$0xff]  ;;  %v100_v43 = vmax.f32 %v281_v5, 0.0  ;;  %v104_v45 = vmul.f32 %v92_v35, %v281_v5  ;;  %v101_v47 = vmax.f32 %v286_v7, 0.0 }
   0x8   :  { %225 = vpow2.f32 %v118_v10  ;;  %v124_v19 = vmul.f32 1.442695, %v117_v17  ;;  %v105_v50 = vmul.f32 %v93_v40, %v286_v7  ;;  %v106_v53 = vsub.f32 %v98_v29, %v102_v30 }
   0x9   :  { %227 = vpow2.f32 %v120_v14  ;;  %v107_v59 = vsub.f32 %v99_v31, %v103_v34  ;;  %v108_v61 = vsub.f32 %v100_v43, %v104_v45 }
   0xa   :  { %229 = vpow2.f32 %v122_v18  ;;  %v109_v2 = vsub.f32 %v101_v47, %v105_v50 }
   0xb   :  { %231 = vpow2.f32 %v124_v19 }
   0xe   :  { %v226_v20 = vpop.eup %225 }
   0xf   :  { %v228_v22 = vpop.eup %227  ;;  %v126_v23 = vadd.f32 1.0, %v226_v20  ;;  %v129_v24 = vmul.f32 -0.5, %v226_v20  ;;  %v132_v37 = vand.u32 2147483647, %v226_v20 }
  0x10   :  { %v135_v26 = vadd.f32 1.0, %v228_v22  ;;  %v138_v27 = vmul.f32 -0.5, %v228_v22  ;;  %v230_v28 = vpop.eup %229  ;;  %v141_v42 = vand.u32 2147483647, %v228_v22 }
  0x11   :  { %233 = vlog2.f32 %v126_v23  ;;  %v232_v32 = vpop.eup %231  ;;  %v130_v33 = vadd.f32 1.0, %v129_v24  ;;  %v144_v36 = vadd.f32 1.0, %v230_v28  ;;  %v147_v39 = vmul.f32 -0.5, %v230_v28 }
  0x12   :  { %235 = vlog2.f32 %v135_v26  ;;  %v139_v38 = vadd.f32 1.0, %v138_v27  ;;  %v153_v41 = vadd.f32 1.0, %v232_v32  ;;  %v156_v44 = vmul.f32 -0.5, %v232_v32 }
  0x13   :  { %237 = vlog2.f32 %v144_v36  ;;  %v148_v46 = vadd.f32 1.0, %v147_v39  ;;  %v131_v48 = vmul.f32 %v226_v20, %v130_v33  ;;  %v150_v49 = vand.u32 2147483647, %v230_v28 }
  0x14   :  { %239 = vlog2.f32 %v153_v41  ;;  %v157_v51 = vadd.f32 1.0, %v156_v44  ;;  %vm341_vm0 = vcmp.lt.f32.partialorder %v132_v37, 0.0004427343  ;;  %v140_v55 = vmul.f32 %v228_v22, %v139_v38 }
  0x15   :  { %v159_v56 = vand.u32 2147483647, %v232_v32  ;;  %vm142_vm1 = vcmp.lt.f32.partialorder %v141_v42, 0.0004427343  ;;  %v149_v62 = vmul.f32 %v230_v28, %v148_v46  ;;  %vm151_vm2 = vcmp.lt.f32.partialorder %v150_v49, 0.0004427343 }
  0x16   :  { %v158_v3 = vmul.f32 %v232_v32, %v157_v51 }
  0x17   :  { %v234_v52 = vpop.eup %233  ;;  %vm160_vm3 = vcmp.lt.f32.partialorder %v159_v56, 0.0004427343 }
  0x18   :  { %v236_v57 = vpop.eup %235  ;;  %v128_v58 = vmul.f32 0.6931472, %v234_v52 }
  0x19   :  { %v137_v60 = vmul.f32 0.6931472, %v236_v57  ;;  %v238_v63 = vpop.eup %237 }
  0x1a   :  { %v134_v0 = vsel %vm341_vm0, %v131_v48, %v128_v58  ;;  %v240_v4 = vpop.eup %239  ;;  %v146_v7 = vmul.f32 0.6931472, %v238_v63 }
  0x1b   :  { %v162_v5 = vadd.f32 %v134_v0, %v106_v53  ;;  %v143_v6 = vsel %vm142_vm1, %v140_v55, %v137_v60  ;;  %v155_v9 = vmul.f32 0.6931472, %v240_v4 }
  0x1c   :  { %v163_v8 = vadd.f32 %v143_v6, %v107_v59  ;;  %v152_v13 = vsel %vm151_vm2, %v149_v62, %v146_v7 }
  0x1d   :  { %v166_v10 = vmul.f32 %v162_v5, %v269_v1  ;;  %v164_v15 = vadd.f32 %v152_v13, %v108_v61  ;;  %v161_v17 = vsel %vm160_vm3, %v158_v3, %v155_v9 }
  0x1e   :  { %v167_v14 = vmul.f32 %v163_v8, %v296_v11  ;;  %v165_v18 = vadd.f32 %v161_v17, %v109_v2 }
  0x1f   :  { %v168_v19 = vmul.f32 %v164_v15, %v301_v12  ;;  %186 = vst [vmem:[%s365_s3] sm:$0xff] %v166_v10 }
  0x20   :  { %v169_v20 = vmul.f32 %v165_v18, %v307_v16  ;;  %187 = vst [vmem:[%s365_s3 + $0x8] sm:$0xff] %v167_v14 }
  0x21   :  { %188 = vst [vmem:[%s365_s3 + $0x10] sm:$0xff] %v168_v19 }
  0x22   :  { %189 = vst [vmem:[%s365_s3 + $0x18] sm:$0xff] %v169_v20 }

</bundles_post_ra>
